<compile_context>
chip_gen: v6e
topology: v6e:2x2x1
jax: 0.10.0
libtpu: 0.0.40
codegen_flags: <defaults>
</compile_context>

<pallas_src>
import jax
import jax.numpy as jnp
from jax.experimental import pallas as pl
from jax.experimental.pallas import tpu as pltpu


def _token_embedding_kernel(ids_ref, table_hbm, out_ref, sem):
    # ids_ref:   SMEM (Np,) int32   -- all (padded) token ids, scalar-prefetched
    # table_hbm: HBM  (V, H)        -- full embedding table (manual DMA source)
    # out_ref:   VMEM (T, H)        -- output block for this tile of tokens
    # sem:       DMA semaphore shared by this tile's row copies
    tile = pl.program_id(0)
    T = out_ref.shape[0]
    V = table_hbm.shape[0]
    base = tile * T

    # Issue one row DMA per token in the tile: HBM row -> output VMEM row.
    @pl.loop(0, T)
    def _issue(t):
        tok = jnp.clip(ids_ref[base + t], 0, V - 1)
        pltpu.make_async_copy(table_hbm.at[tok], out_ref.at[t], sem).start()

    # Wait for all T row copies (same-shaped descriptor => same wait amount).
    @pl.loop(0, T)
    def _wait(t):
        pltpu.make_async_copy(table_hbm.at[0], out_ref.at[0], sem).wait()


def token_embedding_forward(x_ids, table, *, tokens_per_tile: int = 256):
    """Pallas forward: gather table rows for each token id in x_ids."""
    B, S = x_ids.shape
    V, H = table.shape
    N = B * S

    ids = x_ids.reshape(N).astype(jnp.int32)

    # Tokens per grid step: multiple of 8 (f32 sublane) unless N itself is tiny.
    T = min(tokens_per_tile, N)
    if N >= 8:
        T = max(8, (T // 8) * 8)
    num_tiles = pl.cdiv(N, T)
    Np = num_tiles * T
    if Np != N:
        # Pad ids with 0 (valid row); padded rows are dropped after the call.
        ids = jnp.concatenate([ids, jnp.zeros((Np - N,), jnp.int32)])

    out_flat = pl.pallas_call(
        _token_embedding_kernel,
        out_shape=jax.ShapeDtypeStruct((Np, H), table.dtype),
        grid_spec=pltpu.PrefetchScalarGridSpec(
            num_scalar_prefetch=1,
            grid=(num_tiles,),
            in_specs=[pl.BlockSpec(memory_space=pl.ANY)],   # table stays in HBM
            out_specs=pl.BlockSpec((T, H), lambda i, ids: (i, 0)),
            scratch_shapes=[pltpu.SemaphoreType.DMA],
        ),
        compiler_params=pltpu.CompilerParams(
            dimension_semantics=("parallel",),
        ),
    )(ids, table)

    return out_flat[:N].reshape(B, S, H)


if __name__ == "__main__":
    # Small shapes consistent with the module (vob_size=10000, hidden=768 scaled down).
    vob_size = 64
    hidden_size = 128
    batch_size = 2
    seq_len = 8

    key = jax.random.PRNGKey(0)
    k_ids, k_emb = jax.random.split(key)
    x = jax.random.randint(k_ids, (batch_size, seq_len), 0, vob_size, dtype=jnp.int32)
    table = jax.random.normal(k_emb, (vob_size, hidden_size), dtype=jnp.float32)

    out = token_embedding_forward(x, table, tokens_per_tile=8)  # 2 grid steps
    out = jax.block_until_ready(out)

    # Pure-JAX reference of nn.Embedding forward.
    ref = jnp.take(table, x.reshape(-1), axis=0).reshape(batch_size, seq_len, hidden_size)
    assert out.shape == (batch_size, seq_len, hidden_size)
    assert jnp.array_equal(out, ref)

    print("KERNEL_OK")
</pallas_src>

<mosaic_0001>
module attributes {stable_mosaic.version = 11 : i64} {
  func.func @_token_embedding_kernel(%arg0: i32, %arg1: memref<16xi32, #tpu.memory_space<smem>>, %arg2: memref<64x128xf32, #tpu.memory_space<any>>, %arg3: memref<8x128xf32, #tpu.memory_space<vmem>>, %arg4: memref<!tpu.dma_semaphore, #tpu.memory_space<semaphore_mem>>) attributes {dimension_semantics = [#tpu.dimension_semantics<parallel>], iteration_bounds = array<i64: 2>, scalar_prefetch = 1 : i64, scratch_operands = 1 : i64, tpu.core_type = #tpu.core_type<tc>, window_params = [{}, {transform_indices = @transform_1, window_bounds = array<i64: 8, 128>}]} {
    %c8_i32 = arith.constant 8 : i32
    %0 = arith.muli %arg0, %c8_i32 : i32
    %c0_i32 = arith.constant 0 : i32
    %c8_i32_0 = arith.constant 8 : i32
    %1 = arith.addi %c0_i32, %c8_i32_0 : i32
    %c1_i32 = arith.constant 1 : i32
    scf.for %arg5 = %c0_i32 to %1 step %c1_i32  : i32 {
      %c1_i32_5 = arith.constant 1 : i32
      %3 = arith.muli %arg5, %c1_i32_5 : i32
      %c0_i32_6 = arith.constant 0 : i32
      %4 = arith.addi %c0_i32_6, %3 : i32
      %5 = arith.addi %0, %4 : i32
      %6 = arith.index_cast %5 : i32 to index
      %7 = memref.load %arg1[%6] : memref<16xi32, #tpu.memory_space<smem>>
      %c0_i32_7 = arith.constant 0 : i32
      %c63_i32 = arith.constant 63 : i32
      %8 = arith.maxsi %c0_i32_7, %7 : i32
      %9 = arith.minsi %c63_i32, %8 : i32
      %c0_i32_8 = arith.constant 0 : i32
      %10 = tpu.memref_slice %arg2[%9, %c0_i32_8] : memref<64x128xf32, #tpu.memory_space<any>> -> memref<1x128xf32, #tpu.memory_space<any>>
      %11 = tpu.memref_squeeze %10 : memref<1x128xf32, #tpu.memory_space<any>> -> memref<128xf32, #tpu.memory_space<any>>
      %c0_i32_9 = arith.constant 0 : i32
      %12 = tpu.memref_slice %arg3[%4, %c0_i32_9] : memref<8x128xf32, #tpu.memory_space<vmem>> -> memref<1x128xf32, #tpu.memory_space<vmem>>
      %13 = tpu.memref_squeeze %12 : memref<1x128xf32, #tpu.memory_space<vmem>> -> memref<128xf32, #tpu.memory_space<vmem>>
      tpu.enqueue_dma source(%11 : memref<128xf32, #tpu.memory_space<any>>) target(%13 : memref<128xf32, #tpu.memory_space<vmem>>) target_semaphore(%arg4 : memref<!tpu.dma_semaphore, #tpu.memory_space<semaphore_mem>>)
    }
    %c8_i32_1 = arith.constant 8 : i32
    %c0_i32_2 = arith.constant 0 : i32
    %c8_i32_3 = arith.constant 8 : i32
    %2 = arith.addi %c0_i32_2, %c8_i32_3 : i32
    %c1_i32_4 = arith.constant 1 : i32
    scf.for %arg5 = %c0_i32_2 to %2 step %c1_i32_4  : i32 {
      %c0_i32_5 = arith.constant 0 : i32
      %c0_i32_6 = arith.constant 0 : i32
      %c0_i32_7 = arith.constant 0 : i32
      %3 = tpu.memref_slice %arg2[%c0_i32_5, %c0_i32_7] : memref<64x128xf32, #tpu.memory_space<any>> -> memref<1x128xf32, #tpu.memory_space<any>>
      %4 = tpu.memref_squeeze %3 : memref<1x128xf32, #tpu.memory_space<any>> -> memref<128xf32, #tpu.memory_space<any>>
      %c0_i32_8 = arith.constant 0 : i32
      %5 = tpu.memref_slice %arg3[%c0_i32_6, %c0_i32_8] : memref<8x128xf32, #tpu.memory_space<vmem>> -> memref<1x128xf32, #tpu.memory_space<vmem>>
      %6 = tpu.memref_squeeze %5 : memref<1x128xf32, #tpu.memory_space<vmem>> -> memref<128xf32, #tpu.memory_space<vmem>>
      tpu.wait_dma2 semaphore(%arg4 : memref<!tpu.dma_semaphore, #tpu.memory_space<semaphore_mem>>) src(%4 : memref<128xf32, #tpu.memory_space<any>>) dst(%6 : memref<128xf32, #tpu.memory_space<vmem>>)
    }
    return
  }
  func.func @transform_1(%arg0: i32, %arg1: memref<16xi32, #tpu.memory_space<smem>>) -> (i32, i32) {
    %c0_i32 = arith.constant 0 : i32
    %c0_i32_0 = arith.constant 0 : i32
    return %arg0, %c0_i32 : i32, i32
  }
}

</mosaic_0001>

<bundles_post_ra>
// kernel: tpu_custom_call.1
= control target key start
LH: loop header
LB: loop body
LE: loop exit
PB: predicated region body
PF: predicated region fallthrough
CT: control target
= control target key end

     0   :  { %s333_s9 = smov [#allocation4]   ;;  %s463_s0 = inlined_call_operand.hbm [shape: s32[16], index: 0, kind: input, shape index: {}]   ;;  %s464_s1 = inlined_call_operand.hbm [shape: f32[64,128], index: 1, kind: input, shape index: {}]   ;;  %s465_s2 = inlined_call_operand.hbm [shape: f32[16,128], index: 2, kind: output, shape index: {}]  }
   0x1   :  { %8 = dma.hbm_to_smem %s463_s0, 16, %s333_s9, [#allocation3] }
   0x2   :  { %305 = dma.done.wait [#allocation3], 16 }
   0x3   :  { %306 = vsyncadd [#allocation3], 4294967280 }
   0x4   :  { %10 = sfence }
   0x5   :  { %11 = vsyncpa [#allocation6], 0 }
   0x6   :  { %13 = vsyncpa [#allocation6 + $0x1], 0  ;;  %s353_s12 = smov 0   ;;  %s355_s13 = smov 0  }
   0x7   :  { %s357_s14 = smov 0  }
   0x8 LB: > { %s163_s0 = sadd.s32 4294967295, %s323_s14   ;;  %s370_s15 = sadd.s32 1, %s323_s14   ;;  %s323_s14 = sphi %s357_s14, %s470_s14   ;;  %s319_s13 = sphi %s355_s13, %s469_s13   ;;  %s315_s12 = sphi %s353_s12, %s468_s12  }
   0x9   : > { %s22_s16 = ssub.s32 %s323_s14, %s370_s15  ;;  %s25_s17 = sadd.s32 1, %s319_s13 }
   0xa   : > { %p23_p0 = scmp.eq.s32.totalorder %s22_s16, 0  ;;  %p164_p1 = scmp.ne.s32.totalorder %s22_s16, 0 }
   0xb   : > { %p29_p2 = scmp.eq.s32.totalorder %s323_s14, 1  ;;  %p34_p3 = scmp.ne.s32.totalorder %s319_s13, %s315_s12 }
   0xc   : > { %s379_s18 = scalar_select %p23_p0, %s319_s13, %s25_s17  }
   0xd   : > { %p381_p4 = por %p164_p1, %p29_p2  ;;  %p35_p5 = scmp.eq.s32.totalorder %s163_s0, 1 }
   0xe   : > { %p165_p7 = scmp.ge.s32.totalorder %s323_s14, 2 }
   0xf   : > { %p385_p6 = por %p35_p5, %p34_p3  ;;  %s49_s21 = sand.u32 (!%p165_p7), 1, %s319_s13  }
  0x10   : > { %44 = sbr.rel (%p165_p7) target bundleno = 87 (0x57), region = 12  ;;  %s167_s22 = sshll.u32 (!%p165_p7), %s323_s14, 3 }
  0x11   : > { %s394_s23 = sshll.u32 (!%p165_p7), %s49_s21, 3  ;;  %s397_s25 = smov (!%p165_p7), 0  }
  0x12   : > { %s51_s24 = scalar_lea.vmem (!%p165_p7), [#allocation5], %s394_s23 }
  0x15 LB: >> { %s59_s26 = sadd.s32 %s327_s25, %s167_s22  ;;  %s67_s28 = scalar_lea.vmem %s51_s24, %s327_s25 [#allocation5]  ;;  %s327_s25 = sphi %s397_s25, %s58_s25  }
  0x16   : >> { %s60_s27 = sld [smem:[#allocation4 + %s59_s26]]  ;;  %s75_s29 = sshll.u32 %s67_s28, 4  ;;  %s76_s29 = int_to_ptr.vmem [resolvable:$true] %s75_s29 }
  0x17   : >> { %s239_s9 = scalar_lea.hbm %s464_s1, 1024 }
  0x1c   : >> { %p61_p8 = scmp.gt.s32.totalorder %s60_s27, 0  ;;  %p168_p9 = scmp.lt.s32.totalorder %s60_s27, 63 }
  0x1e   : >> { %s472_s27 = smov (!%p61_p8, %s60_s27), 0 }
  0x1f   : >> { %s474_s27 = smov (!%p168_p9, %s472_s27), 63 }
  0x20   : >> { %s173_s30 = sshll.u32 %s474_s27, 4 }
  0x21   : >> { %s66_s5 = scalar_lea.hbm %s464_s1, %s173_s30 }
  0x22   : >> { %s237_s6 = scalar_lea.hbm %s66_s5, 16  ;;  %p240_p11 = scmp.lt.s32.totalorder %s66_s5, %s464_s1 }
  0x23   : >> { %p238_p10 = scmp.ne.s32.totalorder %s66_s5, %s237_s6  ;;  %p241_p12 = scmp.lt.s32.totalorder %s239_s9, %s237_s6 }
  0x25   : >> { %p242_p13 = por %p241_p12, %p240_p11 }
  0x27   : >> { %p243_p0 = pnand %p242_p13, %p238_p10 }
  0x29   : >> { %246 = shalt.err (!%p243_p0)  }
  0x2a   : >> { %s247_s0 = scalar_lea.vmem %s76_s29, 16  ;;  %s334_s16 = smov [#allocation5]  }
  0x2b   : >> { %p248_p1 = scmp.ne.s32.totalorder %s76_s29, %s247_s0  ;;  %s249_s17 = sshll.u32 %s334_s16, 4  ;;  %s417_s17 = int_to_ptr.vmem [resolvable:$false] %s249_s17 }
  0x2c   : >> { %s251_s26 = scalar_lea.vmem %s417_s17, 256  ;;  %p252_p2 = scmp.lt.s32.totalorder %s76_s29, %s417_s17 }
  0x2d   : >> { %p253_p3 = scmp.lt.s32.totalorder %s251_s26, %s247_s0 }
  0x2f   : >> { %p254_p5 = por %p253_p3, %p252_p2 }
  0x31   : >> { %p255_p7 = pnand %p254_p5, %p248_p1 }
  0x33   : >> { %258 = shalt.err (!%p255_p7)  }
  0x34   : >> { %78 = dma.hbm_to_vmem [thread:$0]  %s66_s5, 16, %s76_s29, [#allocation2] }
  0x35   : >> { %s58_s25 = sadd.s32 1, %s327_s25  }
  0x36   : >> { %p55_p8 = scmp.ge.s32.totalorder %s58_s25, 8  }
  0x37   : > { %s329_s27 = smov (%p55_p8), 0  }
  0x38   : > { %57 = sbr.rel (!%p55_p8) target bundleno = 21 (0x15), region = 64 }
  0x3d LB: >> { %307 = dma.done.wait [#allocation2], 16  ;;  %s331_s27 = sphi %s329_s27, %s84_s27  }
  0x3e   : >> { %308 = vsyncadd [#allocation2], 4294967280  ;;  %s84_s27 = sadd.s32 1, %s331_s27  }
  0x3f   : >> { %p81_p9 = scmp.ge.s32.totalorder %s84_s27, 8  }
  0x40   : > { %s175_s28 = sshll.u32 (%p81_p9), %s323_s14, 7  ;;  %s101_s30 = sshll.u32 (%p81_p9), %s51_s24, 4  ;;  %s102_s30 = int_to_ptr.vmem [resolvable:$true] %s101_s30 }
  0x41   : > { %83 = sbr.rel (!%p81_p9) target bundleno = 61 (0x3d), region = 75  ;;  %s99_s22 = scalar_lea.hbm (%p81_p9), %s465_s2, %s175_s28 }
  0x42   : > { %s88_s3 = scalar_lea.sflag (%p81_p9), [#allocation6], %s49_s21  ;;  %s259_s4 = scalar_lea.vmem (%p81_p9), %s102_s30, 128 }
  0x43   : > { %p260_p10 = scmp.ne.s32.totalorder (%p81_p9), %s102_s30, %s259_s4  ;;  %p266_p13 = scmp.lt.s32.totalorder (%p81_p9), %s102_s30, %s417_s17 }
  0x44   : > { %p267_p0 = scmp.lt.s32.totalorder (%p81_p9), %s251_s26, %s259_s4 }
  0x45   : > { %p261_p11 = pnand (%p81_p9), %p260_p10, %p381_p4 }
  0x46   : > { %p268_p1 = por %p267_p0, %p266_p13 }
  0x47   : > { %p262_p12 = pneg %p261_p11 }
  0x49   : > { %p269_p2 = pnand %p268_p1, %p262_p12 }
  0x4b   : > { %272 = shalt.err (!%p269_p2)
}
  0x4c   : > { %s273_s5 = scalar_lea.hbm %s99_s22, 128  ;;  %s277_s21 = scalar_lea.hbm %s465_s2, 256 }
  0x4d   : > { %p274_p3 = scmp.ne.s32.totalorder %s99_s22, %s273_s5  ;;  %p278_p8 = scmp.lt.s32.totalorder %s99_s22, %s465_s2 }
  0x4e   : > { %p279_p9 = scmp.lt.s32.totalorder %s277_s21, %s273_s5 }
  0x4f   : > { %p275_p5 = pnand %p274_p3, %p381_p4 }
  0x50   : > { %p280_p10 = por %p279_p9, %p278_p8 }
  0x51   : > { %p276_p7 = pneg %p275_p5 }
  0x53   : > { %p281_p11 = pnand %p280_p10, %p276_p7 }
  0x55   : > { %284 = shalt.err (!%p281_p11)
}
  0x56   : > { %181 = dma.vmem_to_hbm [thread:$0]  (%p381_p4), %s102_s30, 128, %s99_s22, %s88_s3  }
  0x57 PF: > { %p187_p12 = scmp.ge.s32.totalorder %s323_s14, 1  ;;  %s113_s8 = sand.u32 1, %s315_s12  }
  0x58   : > { %s114_s9 = scalar_lea.sflag [#allocation6], %s113_s8 }
  0x59   : > { %p184_p13 = pnand %p187_p12, %p385_p6 }
  0x5b   : > { %p185_p0 = pneg %p184_p13 }
  0x5d   : > { %310 = dma.done.wait (%p185_p0), %s114_s9, 128  }
  0x5e   : > { %312 = vsyncadd (%p185_p0), %s114_s9, 4294967168  ;;  %p16_p1 = scmp.ge.s32.totalorder %s370_s15, 3   ;;  %s468_s12 = smov %s319_s13 }
  0x5f   : > { %s469_s13 = smov %s379_s18  ;;  %s470_s14 = smov %s370_s15 }
  0x60   :  { %18 = sbr.rel (!%p16_p1) target bundleno = 8 (0x8), region = 86 }
  0x65   :  { %119 = vsyncpa [#allocation6], 1 }
  0x66   :  { %121 = vsyncpa [#allocation6 + $0x1], 1 }
  0x67   :  { %122 = vsyncmov [#allocation2] }
  0x6a   :  { %s123_s14 = vpop.sfrf %122 }
  0x6b   :  { %p178_p4 = scmp.ne.s32.totalorder %s123_s14, 0 }
  0x6d   :  { %127 = shalt.err (%p178_p4)  }

</bundles_post_ra>
